<compile_context>
chip_gen: v5e
topology: v5e:2x2
jax: 0.10.0
libtpu: 0.0.40
codegen_flags: <defaults>
</compile_context>

<pallas_src>
import functools

import jax
import jax.numpy as jnp
from jax.experimental import pallas as pl
from jax.experimental.pallas import tpu as pltpu


def _act_kernel(x_ref, o_ref, *, c1, c2):
    """c1/c2 are tuples of Python floats: coefficient_i / div (pre-divided)."""
    x = x_ref[...]
    pos = x > 0  # computed once, reused for every term's coefficient select

    acc = jnp.zeros_like(x)
    for i in range(len(c1)):
        # Shared power for both branches (identical exponents in the module).
        if i == 0:
            p = x                                   # x ** 1
        elif i == 1:
            p = jnp.sqrt(x)                         # x ** 0.5 (NaN for x < 0, like pow)
        else:
            # Keep the general pow (exp/log) path so x <= 0 yields NaN,
            # matching torch.pow semantics (do NOT substitute cbrt here).
            p = jnp.power(x, 1.0 / (i + 1))
        coeff = jnp.where(pos, c1[i], c2[i])        # scalar pair -> one select/term
        acc = acc + coeff * p

    o_ref[...] = acc


def act_pallas(x, out_s):
    """x: NCHW float32 array. out_s: ((div, c1, c2, ...), (unused_div, d1, d2, ...))."""
    # Faithful to the PyTorch module: out_s[0][0] divides BOTH branches.
    div = float(out_s[0][0])
    c1 = tuple(float(v) / div for v in out_s[0][1:])
    c2 = tuple(float(v) / div for v in out_s[1][1:])
    assert len(c1) == len(c2), "helper assumes equal-length coefficient lists"

    orig_shape = x.shape
    total = x.size
    lanes = 128
    assert total % lanes == 0, "demo helper assumes size divisible by 128"
    rows = total // lanes
    x2d = x.reshape(rows, lanes)

    # Toy sizes: one block, one grid step (no pipeline overhead).
    # Production sizes: lane-dense 512-row f32 tiles (~256 KB), parallel grid
    # axis so the rows shard across v7x's two TensorCores; comfortably within
    # the 64 MiB physical / 32 MiB scoped VMEM budget with double buffering.
    max_block_rows = 512
    if rows <= max_block_rows:
        block_rows = rows
    else:
        block_rows = max_block_rows
        assert rows % block_rows == 0, "demo helper assumes divisible row count"
    grid = (rows // block_rows,)

    kernel = functools.partial(_act_kernel, c1=c1, c2=c2)

    # EUP transcendentals per element: sqrt (i=1) + log+exp per term with i>=2.
    n_terms = len(c1)
    n_trans = (1 if n_terms >= 2 else 0) + 2 * max(0, n_terms - 2)

    out2d = pl.pallas_call(
        kernel,
        out_shape=jax.ShapeDtypeStruct((rows, lanes), x2d.dtype),
        grid_spec=pltpu.PrefetchScalarGridSpec(
            num_scalar_prefetch=0,
            grid=grid,
            in_specs=[pl.BlockSpec((block_rows, lanes), lambda i: (i, 0))],
            out_specs=pl.BlockSpec((block_rows, lanes), lambda i: (i, 0)),
        ),
        compiler_params=pltpu.CompilerParams(
            dimension_semantics=("parallel",),
        ),
        cost_estimate=pl.CostEstimate(
            flops=3 * n_terms * total,           # mul + add + select per term
            transcendentals=n_trans * total,
            bytes_accessed=2 * 4 * total,        # f32 in + f32 out
        ),
    )(x2d)

    return out2d.reshape(orig_shape)


def act_ref(x, out_s):
    """Pure-JAX reference mirroring the PyTorch forward exactly."""
    div1 = out_s[0][0]
    output1 = jnp.zeros(x.shape, dtype=x.dtype)
    for i, num in enumerate(out_s[0][1:]):
        output1 = output1 + num / div1 * jnp.power(x, 1.0 / (i + 1))
    div2 = out_s[0][0]  # intentional: the module reuses out_s[0][0]
    output2 = jnp.zeros(x.shape, dtype=x.dtype)
    for i, num in enumerate(out_s[1][1:]):
        output2 = output2 + num / div2 * jnp.power(x, 1.0 / (i + 1))
    return jnp.where(x > 0, output1, output2)


if __name__ == "__main__":
    # Deterministic "parameters" of the module (__init__ takes out_s directly).
    out_s = (
        (2.0, 1.0, 0.5, 0.25),   # divisor + 3 polynomial-root coefficients
        (3.0, -1.0, 0.75, 0.1),  # (this branch's divisor is unused, per module)
    )

    key = jax.random.PRNGKey(0)
    x = jax.random.normal(key, (2, 4, 16, 16), dtype=jnp.float32)  # NCHW

    out = act_pallas(x, out_s)
    out = jax.block_until_ready(out)

    ref = act_ref(x, out_s)
    # NaNs appear for x <= 0 with fractional exponents, exactly like torch.pow;
    # compare with NaN-equality to verify matching semantics.
    ok = bool(
        jnp.all(
            jnp.isclose(out, ref, rtol=1e-5, atol=1e-5)
            | (jnp.isnan(out) & jnp.isnan(ref))
        )
    )
    assert ok, "Pallas output mismatch vs JAX reference"
    print("KERNEL_OK")
</pallas_src>

<mosaic_0001>
module attributes {stable_mosaic.version = 11 : i64} {
  func.func @_act_kernel(%arg0: i32, %arg1: memref<16x128xf32, #tpu.memory_space<vmem>>, %arg2: memref<16x128xf32, #tpu.memory_space<vmem>>) attributes {dimension_semantics = [#tpu.dimension_semantics<parallel>], iteration_bounds = array<i64: 1>, scalar_prefetch = 0 : i64, scratch_operands = 0 : i64, tpu.core_type = #tpu.core_type<tc>, window_params = [{transform_indices = @transform_0, window_bounds = array<i64: 16, 128>}, {transform_indices = @transform_1, window_bounds = array<i64: 16, 128>}]} {
    %c0 = arith.constant 0 : index
    %c0_0 = arith.constant 0 : index
    %0 = vector.load %arg1[%c0, %c0_0] : memref<16x128xf32, #tpu.memory_space<vmem>>, vector<16x128xf32>
    %cst = arith.constant 0.000000e+00 : f32
    %1 = vector.broadcast %cst : f32 to vector<16x128xf32>
    %2 = arith.cmpf ogt, %0, %1 : vector<16x128xf32>
    %cst_1 = arith.constant 0.000000e+00 : f32
    %3 = vector.broadcast %cst_1 : f32 to vector<16x128xf32>
    %cst_2 = arith.constant 5.000000e-01 : f32
    %cst_3 = arith.constant -5.000000e-01 : f32
    %4 = vector.broadcast %cst_2 : f32 to vector<16x128xf32>
    %5 = vector.broadcast %cst_3 : f32 to vector<16x128xf32>
    %6 = arith.select %2, %4, %5 : vector<16x128xi1>, vector<16x128xf32>
    %7 = arith.mulf %6, %0 : vector<16x128xf32>
    %8 = arith.addf %3, %7 : vector<16x128xf32>
    %9 = math.sqrt %0 : vector<16x128xf32>
    %cst_4 = arith.constant 2.500000e-01 : f32
    %cst_5 = arith.constant 3.750000e-01 : f32
    %10 = vector.broadcast %cst_4 : f32 to vector<16x128xf32>
    %11 = vector.broadcast %cst_5 : f32 to vector<16x128xf32>
    %12 = arith.select %2, %10, %11 : vector<16x128xi1>, vector<16x128xf32>
    %13 = arith.mulf %12, %9 : vector<16x128xf32>
    %14 = arith.addf %8, %13 : vector<16x128xf32>
    %cst_6 = arith.constant 0.333333343 : f32
    %15 = vector.broadcast %cst_6 : f32 to vector<16x128xf32>
    %16 = math.powf %0, %15 : vector<16x128xf32>
    %cst_7 = arith.constant 1.250000e-01 : f32
    %cst_8 = arith.constant 5.000000e-02 : f32
    %17 = vector.broadcast %cst_7 : f32 to vector<16x128xf32>
    %18 = vector.broadcast %cst_8 : f32 to vector<16x128xf32>
    %19 = arith.select %2, %17, %18 : vector<16x128xi1>, vector<16x128xf32>
    %20 = arith.mulf %19, %16 : vector<16x128xf32>
    %21 = arith.addf %14, %20 : vector<16x128xf32>
    %c0_9 = arith.constant 0 : index
    %c0_10 = arith.constant 0 : index
    %22 = vector.load %arg2[%c0_9, %c0_10] : memref<16x128xf32, #tpu.memory_space<vmem>>, vector<16x128xf32>
    tpu.vector_store %arg2[%c0_9, %c0_10], %21 {strides = array<i32>} : memref<16x128xf32, #tpu.memory_space<vmem>>, vector<16x128xf32>,
    return
  }
  func.func @transform_0(%arg0: i32) -> (i32, i32) {
    %c0_i32 = arith.constant 0 : i32
    %c0_i32_0 = arith.constant 0 : i32
    return %arg0, %c0_i32 : i32, i32
  }
  func.func @transform_1(%arg0: i32) -> (i32, i32) {
    %c0_i32 = arith.constant 0 : i32
    %c0_i32_0 = arith.constant 0 : i32
    return %arg0, %c0_i32 : i32, i32
  }
}

</mosaic_0001>

<bundles_post_ra>
// kernel: tpu_custom_call.1
= control target key start
LH: loop header
LB: loop body
LE: loop exit
PB: predicated region body
PF: predicated region fallthrough
CT: control target
= control target key end

     0   :  { %6 = vsyncpa [#allocation3], 0  ;;  %s310_s0 = inlined_call_operand.hbm [shape: f32[16,128], index: 0, kind: input, shape index: {}]   ;;  %s311_s1 = inlined_call_operand.hbm [shape: f32[16,128], index: 1, kind: output, shape index: {}]  }
   0x1   :  { %7 = vsyncpa [#allocation4], 0  ;;  %s12_s8 = sshll.u32 %s310_s0, 4  ;;  %s213_s9 = smov [#allocation2]   ;;  %s13_s8 = int_to_ptr.hbm [resolvable:$true] %s12_s8 }
   0x2   :  { %s14_s10 = sshll.u32 %s213_s9, 4  ;;  %s214_s11 = smov 128   ;;  %s15_s10 = int_to_ptr.vmem [resolvable:$true] %s14_s10 }
   0x3   :  { %s215_s12 = smov 8  }
   0x4   :  { %20 = dma.hbm_to_vmem [thread:$0]  %s13_s8, 256, %s15_s10, [#allocation3], %s214_s11, %s214_s11, %s215_s12  }
   0x5   :  { %209 = dma.done.wait [#allocation3], 256  }
   0x6   :  { %210 = vsyncadd [#allocation3], 4294967040  ;;  %v236_v0 = vld [vmem:[#allocation2] sm:$0xff]  ;;  %v238_v1 = vld [vmem:[#allocation2 + $0x8] sm:$0xff]  ;;  %v216_v38 = vmov -0.5   ;;  %v217_v42 = vmov 0.375  }
   0x7   :  { %149 = vrsqrt.f32 %v236_v0  ;;  %v242_v2 = vand.u32 2147483647, %v236_v0  ;;  %v246_v3 = vand.u32 2147483647, %v238_v1  ;;  %vm42_vm0 = vcmp.eq.f32.partialorder %v236_v0, inf  ;;  %s219_s0 = smov [#allocation5]  }
   0x8   :  { %151 = vrsqrt.f32 %v238_v1  ;;  %vm27_vm1 = vcmp.gt.f32.partialorder %v236_v0, 0.0  ;;  %v45_v31 = vand.u32 2147483648, %v236_v0  ;;  %vm54_vm2 = vcmp.eq.f32.partialorder %v238_v1, inf  ;;  %s79_s13 = sshll.u32 %s219_s0, 4  ;;  %s81_s16 = sshll.u32 %s311_s1, 4  ;;  %s80_s13 = int_to_ptr.vmem [resolvable:$true] %s79_s13  ;;  %s82_s16 = int_to_ptr.hbm [resolvable:$true] %s81_s16 }
   0x9   :  { %153 = vlog2.f32 %v242_v2  ;;  %vm44_vm3 = vcmp.eq.f32.partialorder %v236_v0, 0.0  ;;  %vm28_vm4 = vcmp.gt.f32.partialorder %v238_v1, 0.0  ;;  %v57_v36 = vand.u32 2147483648, %v238_v1 }
   0xa   :  { %155 = vlog2.f32 %v246_v3  ;;  %v29_v39 = vsel %vm27_vm1, 0.5, %v216_v38  ;;  %vm56_vm5 = vcmp.eq.f32.partialorder %v238_v1, 0.0  ;;  %v59_v43 = vsel %vm27_vm1, 0.25, %v217_v42 }
   0xb   :  { %vm95_vm6 = vcmp.lt.f32.partialorder %v236_v0, 0.0  ;;  %vm110_vm7 = vweird.f32 %v242_v2  ;;  %vm112_vm8 = vcmp.eq.f32.partialorder %v242_v2, 0.0  ;;  %v30_v46 = vsel %vm28_vm4, 0.5, %v216_v38 }
   0xc   :  { %v60_v49 = vsel %vm28_vm4, 0.25, %v217_v42  ;;  %v31_v51 = vmul.f32 %v29_v39, %v236_v0  ;;  %vm134_vm9 = vweird.f32 %v246_v3  ;;  %vm97_vm10 = vcmp.eq.f32.partialorder %v242_v2, inf }
   0xd   :  { %v150_v4 = vpop.eup %149  ;;  %vm136_vm11 = vcmp.eq.f32.partialorder %v246_v3, 0.0  ;;  %v32_v56 = vmul.f32 %v30_v46, %v238_v1  ;;  %vm119_vm12 = vcmp.lt.f32.partialorder %v238_v1, 0.0  ;;  %v218_v59 = vmov 0.05  }
   0xe   :  { %v36_v5 = vmul.f32 %v150_v4, %v236_v0  ;;  %v152_v6 = vpop.eup %151  ;;  %v67_v60 = vsel %vm27_vm1, 0.125, %v218_v59  ;;  %vm121_vm13 = vcmp.eq.f32.partialorder %v246_v3, inf }
   0xf   :  { %v48_v8 = vmul.f32 %v152_v6, %v238_v1  ;;  %v154_v9 = vpop.eup %153 }
  0x10   :  { %v37_v7 = vmul.f32 %v150_v4, %v36_v5  ;;  %v100_v10 = vmul.f32 -0.33333334, %v154_v9  ;;  %v156_v12 = vpop.eup %155 }
  0x11   :  { %v49_v11 = vmul.f32 %v152_v6, %v48_v8  ;;  %v124_v14 = vmul.f32 -0.33333334, %v156_v12 }
  0x12   :  { %v38_v13 = vmul.f32 0.5, %v37_v7  ;;  %157 = vpow2.f32 %v100_v10  ;;  %v68_v7 = vsel %vm28_vm4, 0.125, %v218_v59 }
  0x13   :  { %v50_v15 = vmul.f32 0.5, %v49_v11  ;;  %159 = vpow2.f32 %v124_v14 }
  0x14   :  { %v39_v16 = vsub.f32 1.5, %v38_v13 }
  0x15   :  { %v51_v18 = vsub.f32 1.5, %v50_v15 }
  0x16   :  { %v40_v21 = vmul.f32 %v150_v4, %v39_v16 }
  0x17   :  { %v52_v24 = vmul.f32 %v152_v6, %v51_v18 }
  0x18   :  { %v158_v17 = vpop.eup %157  ;;  %v41_v27 = vmul.f32 %v40_v21, %v236_v0 }
  0x19   :  { %v102_v19 = vmul.f32 %v158_v17, %v158_v17  ;;  %v160_v20 = vpop.eup %159  ;;  %v53_v30 = vmul.f32 %v52_v24, %v238_v1 }
  0x1a   :  { %v126_v23 = vmul.f32 %v160_v20, %v160_v20  ;;  %v43_v34 = vsel %vm42_vm0, %v236_v0, %v41_v27 }
  0x1b   :  { %v103_v22 = vmul.f32 %v102_v19, %v242_v2  ;;  %v55_v40 = vsel %vm54_vm2, %v238_v1, %v53_v30  ;;  %v46_v41 = vsel %vm44_vm3, %v45_v31, %v43_v34 }
  0x1c   :  { %v127_v26 = vmul.f32 %v126_v23, %v246_v3  ;;  %v58_v48 = vsel %vm56_vm5, %v57_v36, %v55_v40  ;;  %v61_v52 = vmul.f32 %v59_v43, %v46_v41 }
  0x1d   :  { %v104_v25 = vmul.f32 %v103_v22, %v102_v19  ;;  %v62_v57 = vmul.f32 %v60_v49, %v58_v48 }
  0x1e   :  { %v128_v29 = vmul.f32 %v127_v26, %v126_v23  ;;  %v63_v62 = vadd.f32 %v61_v52, %v31_v51 }
  0x1f   :  { %v105_v28 = vsub.f32 %v104_v25, %v158_v17  ;;  %v64_v9 = vadd.f32 %v62_v57, %v32_v56 }
  0x20   :  { %v129_v33 = vsub.f32 %v128_v29, %v160_v20 }
  0x21   :  { %v106_v32 = vmul.f32 -0.33333334, %v105_v28 }
  0x22   :  { %v130_v37 = vmul.f32 -0.33333334, %v129_v33 }
  0x23   :  { %v107_v35 = vadd.f32 %v158_v17, %v106_v32 }
  0x24   :  { %v131_v45 = vadd.f32 %v160_v20, %v130_v37 }
  0x25   :  { %v108_v44 = vmul.f32 %v107_v35, %v236_v0 }
  0x26   :  { %v132_v50 = vmul.f32 %v131_v45, %v238_v1 }
  0x27   :  { %v109_v47 = vmul.f32 %v108_v44, %v107_v35 }
  0x28   :  { %v133_v54 = vmul.f32 %v132_v50, %v131_v45 }
  0x29   :  { %v111_v53 = vsel %vm110_vm7, %v236_v0, %v109_v47 }
  0x2a   :  { %v114_v55 = vsel %vm112_vm8, %v45_v31, %v111_v53  ;;  %v135_v61 = vsel %vm134_vm9, %v238_v1, %v133_v54 }
  0x2b   :  { %v115_v58 = vsel %vm95_vm6, nan, %v114_v55  ;;  %v138_v4 = vsel %vm136_vm11, %v57_v36, %v135_v61 }
  0x2c   :  { %v116_v63 = vsel %vm44_vm3, 0.0, %v115_v58  ;;  %v139_v6 = vsel %vm119_vm12, nan, %v138_v4 }
  0x2d   :  { %v117_v5 = vsel %vm97_vm10, inf, %v116_v63  ;;  %v140_v10 = vsel %vm56_vm5, 0.0, %v139_v6 }
  0x2e   :  { %v69_v8 = vmul.f32 %v117_v5, %v67_v60  ;;  %v141_v11 = vsel %vm121_vm13, inf, %v140_v10 }
  0x2f   :  { %v70_v3 = vmul.f32 %v141_v11, %v68_v7 }
  0x30   :  { %v71_v0 = vadd.f32 %v69_v8, %v63_v62 }
  0x31   :  { %v72_v2 = vadd.f32 %v70_v3, %v64_v9 }
  0x32   :  { %73 = vst [vmem:[#allocation5] sm:$0xff] %v71_v0 }
  0x33   :  { %74 = vst [vmem:[#allocation5 + $0x8] sm:$0xff] %v72_v2 }
  0x34   :  { %87 = dma.vmem_to_hbm [thread:$0]  %s80_s13, 256, %s82_s16, [#allocation4], %s214_s11, %s214_s11, %s215_s12  }
  0x35   :  { %211 = dma.done.wait [#allocation4], 256  }
  0x36   :  { %212 = vsyncadd [#allocation4], 4294967040 }
  0x37   :  { %92 = vsyncpa [#allocation3], 1 }
  0x38   :  { %93 = vsyncpa [#allocation4], 1 }

</bundles_post_ra>
